<compile_context>
chip_gen: v6e
topology: v6e:2x2x1
jax: 0.10.0
libtpu: 0.0.40
codegen_flags: <defaults>
</compile_context>

<pallas_src>
import functools

import jax
import jax.numpy as jnp
from jax.experimental import pallas as pl
from jax.experimental.pallas import tpu as pltpu

EPS = 1e-8
# Budgeted for v7x's 64 MiB VMEM (tiles below are far smaller); also valid on
# v5e / v6e (128 MiB physical).
_VMEM_LIMIT_BYTES = 64 * 1024 * 1024


def _round_up(x, m):
    return (x + m - 1) // m * m


def _pad_dim(a, axis, target):
    cur = a.shape[axis]
    if cur == target:
        return a
    pads = [(0, 0)] * a.ndim
    pads[axis] = (0, target - cur)
    return jnp.pad(a, pads)


def _depthwise_prelu(alpha_ref, xc_ref, xn_ref, wdw_ref, *, tile_t, K, dilation):
    """Depthwise conv (valid, over [tile + halo] rows) + PReLU for one T-tile."""
    xc = xc_ref[0].astype(jnp.float32)            # (tile_t, C)
    xn = xn_ref[0].astype(jnp.float32)            # (halo_blk, C) next-tile head
    xw = jnp.concatenate([xc, xn], axis=0)        # (tile_t + halo_blk, C)
    w = wdw_ref[...].astype(jnp.float32)          # (K, C)
    acc = xw[0:tile_t, :] * w[0, :][None, :]
    for k in range(1, K):                         # static unroll over taps
        off = k * dilation
        acc = acc + xw[off:off + tile_t, :] * w[k, :][None, :]
    a = alpha_ref[0]                              # PReLU shared parameter (SMEM)
    return jnp.where(acc > 0, acc, a * acc)


def _stats_kernel(alpha_ref, xc_ref, xn_ref, wdw_ref, stat_ref, *,
                  t_valid, tile_t, K, dilation):
    """Pass 1: accumulate per-channel sum and sum-of-squares of PReLU(dwconv)."""
    t = pl.program_id(1)

    @pl.when(t == 0)
    def _init():
        stat_ref[...] = jnp.zeros_like(stat_ref)

    y = _depthwise_prelu(alpha_ref, xc_ref, xn_ref, wdw_ref,
                         tile_t=tile_t, K=K, dilation=dilation)
    # Mask rows past the true output length (last tile may be padded).
    row = t * tile_t + jax.lax.broadcasted_iota(jnp.int32, (tile_t, 1), 0)
    mask = (row < t_valid).astype(jnp.float32)
    ym = y * mask
    s1 = jnp.sum(ym, axis=0, keepdims=True)        # (1, C)
    s2 = jnp.sum(ym * ym, axis=0, keepdims=True)   # (1, C)
    stat_ref[0, 0:1, :] = stat_ref[0, 0:1, :] + s1
    stat_ref[0, 1:2, :] = stat_ref[0, 1:2, :] + s2


def _apply_kernel(alpha_ref, xc_ref, xn_ref, wdw_ref, wf_ref, bias_ref, o_ref, *,
                  tile_t, K, dilation):
    """Pass 2: recompute dwconv+PReLU, then gLN-folded pointwise matmul (bf16 MXU)."""
    y = _depthwise_prelu(alpha_ref, xc_ref, xn_ref, wdw_ref,
                         tile_t=tile_t, K=K, dilation=dilation)
    yb = y.astype(jnp.bfloat16)                                  # bf16 MXU operand
    out = jnp.dot(yb, wf_ref[0], preferred_element_type=jnp.float32)
    o_ref[0] = (out + bias_ref[0]).astype(o_ref.dtype)


@functools.partial(
    jax.jit,
    static_argnames=("kernel_size", "dilation", "stride", "padding", "tile_t"))
def depthwise_separable_conv(x, w_dw, alpha, gamma, beta, w_pw, *,
                             kernel_size, dilation=1, stride=1, padding="same",
                             tile_t=128):
    """x: (B, T, C_in); w_dw: (K, C_in); w_pw: (C_in, C_out); gamma/beta: (C_in,);
    alpha: (1,).  Returns (B, T_out, C_out)."""
    if stride != 1 or padding != "same":
        raise NotImplementedError("only stride=1 / padding='same' implemented")

    B, T, C_in = x.shape
    C_out = w_pw.shape[1]
    K = kernel_size
    halo = dilation * (K - 1)
    pad = halo // 2

    # SpeechBrain get_padding_elem (stride=1) + padding_mode='reflect'
    # (fused into this jit, so no extra standalone HBM round trip).
    x_pad = jnp.pad(x, ((0, 0), (pad, pad), (0, 0)), mode="reflect") if pad > 0 else x
    t_out = T + 2 * pad - halo           # == T when halo is even (usual case)

    # ---- time tiling ----
    tile = max(8, min(tile_t, _round_up(t_out, 8)))
    tile = _round_up(tile, 8)
    assert halo <= tile, "halo larger than time tile; increase tile_t"
    # smallest multiple-of-8 divisor of `tile` that covers the halo
    halo_blk = 8
    for h in range(8, tile + 1, 8):
        if tile % h == 0 and h >= max(halo, 1):
            halo_blk = h
            break
    nxt_step = tile // halo_blk
    n_t = -(-t_out // tile)
    # pad time so that the "next tile head" block of the last tile is in-bounds
    x_pad = _pad_dim(x_pad, 1, (n_t + 1) * tile)

    # ---- lane-dense channel padding (multiples of 128) ----
    cp_in = _round_up(C_in, 128)
    cp_out = _round_up(C_out, 128)
    x_pad = _pad_dim(x_pad, 2, cp_in)
    w_dw_p = _pad_dim(w_dw.astype(jnp.float32), 1, cp_in)
    gamma_p = _pad_dim(gamma.reshape(-1).astype(jnp.float32), 0, cp_in)
    beta_p = _pad_dim(beta.reshape(-1).astype(jnp.float32), 0, cp_in)
    w_pw_p = _pad_dim(_pad_dim(w_pw.astype(jnp.float32), 0, cp_in), 1, cp_out)
    alpha_p = alpha.reshape((1,)).astype(jnp.float32)

    cur_spec = pl.BlockSpec((1, tile, cp_in), lambda b, t: (b, t, 0))
    nxt_spec = pl.BlockSpec((1, halo_blk, cp_in),
                            lambda b, t: (b, (t + 1) * nxt_step, 0))
    wdw_spec = pl.BlockSpec((K, cp_in), lambda b, t: (0, 0))
    alpha_spec = pl.BlockSpec(memory_space=pltpu.MemorySpace.SMEM)

    # ---- pass 1: per-sample gLN statistics (sum, sum of squares per channel) ----
    stats = pl.pallas_call(
        functools.partial(_stats_kernel, t_valid=t_out, tile_t=tile,
                          K=K, dilation=dilation),
        out_shape=jax.ShapeDtypeStruct((B, 2, cp_in), jnp.float32),
        grid=(B, n_t),
        in_specs=[alpha_spec, cur_spec, nxt_spec, wdw_spec],
        out_specs=pl.BlockSpec((1, 2, cp_in), lambda b, t: (b, 0, 0)),
        compiler_params=pltpu.CompilerParams(
            dimension_semantics=("parallel", "arbitrary"),
            vmem_limit_bytes=_VMEM_LIMIT_BYTES),
    )(alpha_p, x_pad, x_pad, w_dw_p)

    # ---- glue: fold gLN (normalize + affine) into the pointwise weights ----
    n_elems = t_out * C_in                       # real (unpadded) element count
    s1 = jnp.sum(stats[:, 0, :], axis=-1)        # (B,)
    s2 = jnp.sum(stats[:, 1, :], axis=-1)
    mean = s1 / n_elems
    var = jnp.maximum(s2 / n_elems - mean * mean, 0.0)   # guard f32 cancellation
    rstd = jax.lax.rsqrt(var + EPS)
    scale = gamma_p[None, :] * rstd[:, None]                          # (B, cp_in)
    w_fold = (scale[:, :, None] * w_pw_p[None, :, :]).astype(jnp.bfloat16)
    shift = beta_p[None, :] - mean[:, None] * scale                   # (B, cp_in)
    bias = jnp.einsum("bc,co->bo", shift, w_pw_p)[:, None, :]         # (B,1,cp_out)

    # ---- pass 2: normalize-folded pointwise conv (bf16 MXU matmul) ----
    out = pl.pallas_call(
        functools.partial(_apply_kernel, tile_t=tile, K=K, dilation=dilation),
        out_shape=jax.ShapeDtypeStruct((B, n_t * tile, cp_out), x.dtype),
        grid=(B, n_t),
        in_specs=[
            alpha_spec, cur_spec, nxt_spec, wdw_spec,
            pl.BlockSpec((1, cp_in, cp_out), lambda b, t: (b, 0, 0)),  # folded W
            pl.BlockSpec((1, 1, cp_out), lambda b, t: (b, 0, 0)),      # folded bias
        ],
        out_specs=pl.BlockSpec((1, tile, cp_out), lambda b, t: (b, t, 0)),
        compiler_params=pltpu.CompilerParams(
            dimension_semantics=("parallel", "parallel"),
            vmem_limit_bytes=_VMEM_LIMIT_BYTES),
    )(alpha_p, x_pad, x_pad, w_dw_p, w_fold, bias)

    return out[:, :t_out, :C_out]


def reference(x, w_dw, alpha, gamma, beta, w_pw, K, dilation):
    """Pure-JAX f32 reference of the module forward (two-pass gLN)."""
    pad = (dilation * (K - 1)) // 2
    xp = jnp.pad(x, ((0, 0), (pad, pad), (0, 0)), mode="reflect") if pad > 0 else x
    t_out = xp.shape[1] - dilation * (K - 1)
    y = sum(xp[:, k * dilation:k * dilation + t_out, :] * w_dw[k][None, None, :]
            for k in range(K))
    y = jnp.where(y > 0, y, alpha[0] * y)
    mean = jnp.mean(y, axis=(1, 2), keepdims=True)
    var = jnp.mean((y - mean) ** 2, axis=(1, 2), keepdims=True)
    y = gamma[None, None, :] * (y - mean) / jnp.sqrt(var + EPS) + beta[None, None, :]
    return jnp.einsum("btc,cd->btd", y, w_pw)


if __name__ == "__main__":
    # Small but lane-dense config (ConvTasNet-like conv-block channels).
    B, T, C_in, C_out, K = 2, 256, 128, 128, 3
    dilation = 2

    key = jax.random.PRNGKey(0)
    k1, k2, k3 = jax.random.split(key, 3)
    x = jax.random.normal(k1, (B, T, C_in), jnp.float32)

    # nn.Conv1d(C_in, C_in, K, groups=C_in, bias=False).weight: (C_in,1,K) -> (K,C_in)
    w_dw_torch = jax.random.normal(k2, (C_in, 1, K), jnp.float32) * 0.1
    w_dw = jnp.transpose(w_dw_torch[:, 0, :], (1, 0))
    # nn.Conv1d(C_in, C_out, 1, bias=False).weight: (C_out,C_in,1) -> (C_in,C_out)
    w_pw_torch = jax.random.normal(k3, (C_out, C_in, 1), jnp.float32) * 0.1
    w_pw = jnp.transpose(w_pw_torch[:, :, 0], (1, 0))

    alpha = jnp.array([0.25], jnp.float32)        # PReLU default init
    gamma = jnp.ones((C_in,), jnp.float32)        # gLN reset_parameters
    beta = jnp.zeros((C_in,), jnp.float32)

    out = depthwise_separable_conv(x, w_dw, alpha, gamma, beta, w_pw,
                                   kernel_size=K, dilation=dilation, tile_t=64)
    out = jax.block_until_ready(out)

    ref = reference(x, w_dw, alpha, gamma, beta, w_pw, K, dilation)
    assert out.shape == ref.shape == (B, T, C_out), (out.shape, ref.shape)
    max_err = float(jnp.max(jnp.abs(out - ref)))
    # Tolerance accounts for bf16 MXU operands (f32 accumulation).
    assert jnp.allclose(out, ref, atol=5e-2, rtol=5e-2), max_err
    print("KERNEL_OK")
</pallas_src>

<mosaic_0001>
module attributes {stable_mosaic.version = 11 : i64} {
  func.func @_stats_kernel(%arg0: i32, %arg1: i32, %arg2: memref<1xf32, #tpu.memory_space<smem>>, %arg3: memref<1x64x128xf32, #tpu.memory_space<vmem>>, %arg4: memref<1x8x128xf32, #tpu.memory_space<vmem>>, %arg5: memref<3x128xf32, #tpu.memory_space<vmem>>, %arg6: memref<1x2x128xf32, #tpu.memory_space<vmem>>) attributes {dimension_semantics = [#tpu.dimension_semantics<parallel>, #tpu.dimension_semantics<arbitrary>], iteration_bounds = array<i64: 2, 4>, scalar_prefetch = 0 : i64, scratch_operands = 0 : i64, tpu.core_type = #tpu.core_type<tc>, window_params = [{transform_indices = @transform_0, window_bounds = array<i64: 1>}, {transform_indices = @transform_1, window_bounds = array<i64: 1, 64, 128>}, {transform_indices = @transform_2, window_bounds = array<i64: 1, 8, 128>}, {pipeline_mode = #tpu.pipeline_mode<synchronous>, transform_indices = @transform_3, window_bounds = array<i64: 3, 128>}, {transform_indices = @transform_4, window_bounds = array<i64: 1, 2, 128>}]} {
    %c0_i32 = arith.constant 0 : i32
    %0 = arith.cmpi eq, %arg1, %c0_i32 : i32
    %1 = arith.extui %0 : i1 to i32
    %c0_i32_0 = arith.constant 0 : i32
    %2 = arith.cmpi ne, %1, %c0_i32_0 : i32
    scf.if %2 {
      %cst_22 = arith.constant 0.000000e+00 : f32
      %62 = vector.broadcast %cst_22 : f32 to vector<1x2x128xf32>
      %c0_23 = arith.constant 0 : index
      %c0_24 = arith.constant 0 : index
      %c0_25 = arith.constant 0 : index
      %63 = vector.load %arg6[%c0_23, %c0_24, %c0_25] : memref<1x2x128xf32, #tpu.memory_space<vmem>>, vector<1x2x128xf32>
      tpu.vector_store %arg6[%c0_23, %c0_24, %c0_25], %62 {strides = array<i32>} : memref<1x2x128xf32, #tpu.memory_space<vmem>>, vector<1x2x128xf32>,
    } else {
    }
    %c0 = arith.constant 0 : index
    %c0_1 = arith.constant 0 : index
    %c0_2 = arith.constant 0 : index
    %3 = vector.load %arg3[%c0, %c0_1, %c0_2] : memref<1x64x128xf32, #tpu.memory_space<vmem>>, vector<1x64x128xf32>
    %4 = vector.shape_cast %3 : vector<1x64x128xf32> to vector<64x128xf32>
    %c0_3 = arith.constant 0 : index
    %c0_4 = arith.constant 0 : index
    %c0_5 = arith.constant 0 : index
    %5 = vector.load %arg4[%c0_3, %c0_4, %c0_5] : memref<1x8x128xf32, #tpu.memory_space<vmem>>, vector<1x8x128xf32>
    %6 = vector.shape_cast %5 : vector<1x8x128xf32> to vector<8x128xf32>
    %7 = tpu.concatenate %4, %6 in 0 : vector<64x128xf32>, vector<8x128xf32> -> vector<72x128xf32>
    %c0_6 = arith.constant 0 : index
    %c0_7 = arith.constant 0 : index
    %8 = vector.load %arg5[%c0_6, %c0_7] : memref<3x128xf32, #tpu.memory_space<vmem>>, vector<3x128xf32>
    %9 = vector.extract_strided_slice %7 {offsets = [0, 0], sizes = [64, 128], strides = [1, 1]} : vector<72x128xf32> to vector<64x128xf32>
    %10 = vector.extract_strided_slice %8 {offsets = [0, 0], sizes = [1, 128], strides = [1, 1]} : vector<3x128xf32> to vector<1x128xf32>
    %11 = vector.shape_cast %10 : vector<1x128xf32> to vector<128xf32>
    %12 = vector.shape_cast %11 : vector<128xf32> to vector<1x128xf32>
    %13 = vector.broadcast %12 : vector<1x128xf32> to vector<64x128xf32>
    %14 = arith.mulf %9, %13 : vector<64x128xf32>
    %15 = vector.extract_strided_slice %7 {offsets = [2, 0], sizes = [64, 128], strides = [1, 1]} : vector<72x128xf32> to vector<64x128xf32>
    %16 = vector.extract_strided_slice %8 {offsets = [1, 0], sizes = [1, 128], strides = [1, 1]} : vector<3x128xf32> to vector<1x128xf32>
    %17 = vector.shape_cast %16 : vector<1x128xf32> to vector<128xf32>
    %18 = vector.shape_cast %17 : vector<128xf32> to vector<1x128xf32>
    %19 = vector.broadcast %18 : vector<1x128xf32> to vector<64x128xf32>
    %20 = arith.mulf %15, %19 : vector<64x128xf32>
    %21 = arith.addf %14, %20 : vector<64x128xf32>
    %22 = vector.extract_strided_slice %7 {offsets = [4, 0], sizes = [64, 128], strides = [1, 1]} : vector<72x128xf32> to vector<64x128xf32>
    %23 = vector.extract_strided_slice %8 {offsets = [2, 0], sizes = [1, 128], strides = [1, 1]} : vector<3x128xf32> to vector<1x128xf32>
    %24 = vector.shape_cast %23 : vector<1x128xf32> to vector<128xf32>
    %25 = vector.shape_cast %24 : vector<128xf32> to vector<1x128xf32>
    %26 = vector.broadcast %25 : vector<1x128xf32> to vector<64x128xf32>
    %27 = arith.mulf %22, %26 : vector<64x128xf32>
    %28 = arith.addf %21, %27 : vector<64x128xf32>
    %c0_8 = arith.constant 0 : index
    %29 = memref.load %arg2[%c0_8] : memref<1xf32, #tpu.memory_space<smem>>
    %cst = arith.constant 0.000000e+00 : f32
    %30 = vector.broadcast %cst : f32 to vector<64x128xf32>
    %31 = arith.cmpf ogt, %28, %30 : vector<64x128xf32>
    %32 = vector.broadcast %29 : f32 to vector<64x128xf32>
    %33 = arith.mulf %32, %28 : vector<64x128xf32>
    %34 = arith.select %31, %28, %33 : vector<64x128xi1>, vector<64x128xf32>
    %c64_i32 = arith.constant 64 : i32
    %35 = arith.muli %arg1, %c64_i32 : i32
    %36 = tpu.iota {dimensions = array<i32: 0>} : vector<64x1xi32>
    %37 = vector.broadcast %35 : i32 to vector<64x1xi32>
    %38 = arith.addi %37, %36 : vector<64x1xi32>
    %c256_i32 = arith.constant 256 : i32
    %39 = vector.broadcast %c256_i32 : i32 to vector<64x1xi32>
    %40 = arith.cmpi slt, %38, %39 : vector<64x1xi32>
    %41 = arith.extui %40 : vector<64x1xi1> to vector<64x1xi32>
    %42 = arith.sitofp %41 : vector<64x1xi32> to vector<64x1xf32>
    %43 = vector.broadcast %42 : vector<64x1xf32> to vector<64x128xf32>
    %44 = arith.mulf %34, %43 : vector<64x128xf32>
    %cst_9 = arith.constant dense<0.000000e+00> : vector<128xf32>
    %45 = vector.multi_reduction <add>, %44, %cst_9 [0] : vector<64x128xf32> to vector<128xf32>
    %46 = vector.shape_cast %45 : vector<128xf32> to vector<1x128xf32>
    %47 = arith.mulf %44, %44 : vector<64x128xf32>
    %cst_10 = arith.constant dense<0.000000e+00> : vector<128xf32>
    %48 = vector.multi_reduction <add>, %47, %cst_10 [0] : vector<64x128xf32> to vector<128xf32>
    %49 = vector.shape_cast %48 : vector<128xf32> to vector<1x128xf32>
    %c0_11 = arith.constant 0 : index
    %c0_12 = arith.constant 0 : index
    %c0_13 = arith.constant 0 : index
    %50 = vector.load %arg6[%c0_11, %c0_12, %c0_13] : memref<1x2x128xf32, #tpu.memory_space<vmem>>, vector<1x1x128xf32>
    %51 = vector.shape_cast %50 : vector<1x1x128xf32> to vector<1x128xf32>
    %52 = arith.addf %51, %46 : vector<1x128xf32>
    %c0_14 = arith.constant 0 : index
    %c0_15 = arith.constant 0 : index
    %c0_16 = arith.constant 0 : index
    %53 = vector.load %arg6[%c0_14, %c0_15, %c0_16] : memref<1x2x128xf32, #tpu.memory_space<vmem>>, vector<1x1x128xf32>
    %54 = vector.shape_cast %53 : vector<1x1x128xf32> to vector<1x128xf32>
    %55 = vector.shape_cast %52 : vector<1x128xf32> to vector<1x1x128xf32>
    tpu.vector_store %arg6[%c0_14, %c0_15, %c0_16], %55 {strides = array<i32>} : memref<1x2x128xf32, #tpu.memory_space<vmem>>, vector<1x1x128xf32>,
    %c0_17 = arith.constant 0 : index
    %c1 = arith.constant 1 : index
    %c0_18 = arith.constant 0 : index
    %56 = vector.load %arg6[%c0_17, %c1, %c0_18] : memref<1x2x128xf32, #tpu.memory_space<vmem>>, vector<1x1x128xf32>
    %57 = vector.shape_cast %56 : vector<1x1x128xf32> to vector<1x128xf32>
    %58 = arith.addf %57, %49 : vector<1x128xf32>
    %c0_19 = arith.constant 0 : index
    %c1_20 = arith.constant 1 : index
    %c0_21 = arith.constant 0 : index
    %59 = vector.load %arg6[%c0_19, %c1_20, %c0_21] : memref<1x2x128xf32, #tpu.memory_space<vmem>>, vector<1x1x128xf32>
    %60 = vector.shape_cast %59 : vector<1x1x128xf32> to vector<1x128xf32>
    %61 = vector.shape_cast %58 : vector<1x128xf32> to vector<1x1x128xf32>
    tpu.vector_store %arg6[%c0_19, %c1_20, %c0_21], %61 {strides = array<i32>} : memref<1x2x128xf32, #tpu.memory_space<vmem>>, vector<1x1x128xf32>,
    return
  }
  func.func @transform_0(%arg0: i32, %arg1: i32) -> i32 {
    %c0_i32 = arith.constant 0 : i32
    %c0_i32_0 = arith.constant 0 : i32
    return %c0_i32 : i32
  }
  func.func @transform_1(%arg0: i32, %arg1: i32) -> (i32, i32, i32) {
    %c0_i32 = arith.constant 0 : i32
    %c0_i32_0 = arith.constant 0 : i32
    return %arg0, %arg1, %c0_i32 : i32, i32, i32
  }
  func.func @transform_2(%arg0: i32, %arg1: i32) -> (i32, i32, i32) {
    %c1_i32 = arith.constant 1 : i32
    %0 = arith.addi %arg1, %c1_i32 : i32
    %c8_i32 = arith.constant 8 : i32
    %1 = arith.muli %0, %c8_i32 : i32
    %c0_i32 = arith.constant 0 : i32
    %c0_i32_0 = arith.constant 0 : i32
    return %arg0, %1, %c0_i32 : i32, i32, i32
  }
  func.func @transform_3(%arg0: i32, %arg1: i32) -> (i32, i32) {
    %c0_i32 = arith.constant 0 : i32
    %c0_i32_0 = arith.constant 0 : i32
    %c0_i32_1 = arith.constant 0 : i32
    return %c0_i32, %c0_i32_0 : i32, i32
  }
  func.func @transform_4(%arg0: i32, %arg1: i32) -> (i32, i32, i32) {
    %c0_i32 = arith.constant 0 : i32
    %c0_i32_0 = arith.constant 0 : i32
    %c0_i32_1 = arith.constant 0 : i32
    return %arg0, %c0_i32, %c0_i32_0 : i32, i32, i32
  }
}

module attributes {stable_mosaic.version = 11 : i64} {
  func.func @_apply_kernel(%arg0: i32, %arg1: i32, %arg2: memref<1xf32, #tpu.memory_space<smem>>, %arg3: memref<1x64x128xf32, #tpu.memory_space<vmem>>, %arg4: memref<1x8x128xf32, #tpu.memory_space<vmem>>, %arg5: memref<3x128xf32, #tpu.memory_space<vmem>>, %arg6: memref<1x128x128xbf16, #tpu.memory_space<vmem>>, %arg7: memref<1x1x128xf32, #tpu.memory_space<vmem>>, %arg8: memref<1x64x128xf32, #tpu.memory_space<vmem>>) attributes {dimension_semantics = [#tpu.dimension_semantics<parallel>, #tpu.dimension_semantics<parallel>], iteration_bounds = array<i64: 2, 4>, scalar_prefetch = 0 : i64, scratch_operands = 0 : i64, tpu.core_type = #tpu.core_type<tc>, window_params = [{transform_indices = @transform_0, window_bounds = array<i64: 1>}, {transform_indices = @transform_1, window_bounds = array<i64: 1, 64, 128>}, {transform_indices = @transform_2, window_bounds = array<i64: 1, 8, 128>}, {pipeline_mode = #tpu.pipeline_mode<synchronous>, transform_indices = @transform_3, window_bounds = array<i64: 3, 128>}, {transform_indices = @transform_4, window_bounds = array<i64: 1, 128, 128>}, {transform_indices = @transform_5, window_bounds = array<i64: 1, 1, 128>}, {transform_indices = @transform_6, window_bounds = array<i64: 1, 64, 128>}]} {
    %c0 = arith.constant 0 : index
    %c0_0 = arith.constant 0 : index
    %c0_1 = arith.constant 0 : index
    %0 = vector.load %arg3[%c0, %c0_0, %c0_1] : memref<1x64x128xf32, #tpu.memory_space<vmem>>, vector<1x64x128xf32>
    %1 = vector.shape_cast %0 : vector<1x64x128xf32> to vector<64x128xf32>
    %c0_2 = arith.constant 0 : index
    %c0_3 = arith.constant 0 : index
    %c0_4 = arith.constant 0 : index
    %2 = vector.load %arg4[%c0_2, %c0_3, %c0_4] : memref<1x8x128xf32, #tpu.memory_space<vmem>>, vector<1x8x128xf32>
    %3 = vector.shape_cast %2 : vector<1x8x128xf32> to vector<8x128xf32>
    %4 = tpu.concatenate %1, %3 in 0 : vector<64x128xf32>, vector<8x128xf32> -> vector<72x128xf32>
    %c0_5 = arith.constant 0 : index
    %c0_6 = arith.constant 0 : index
    %5 = vector.load %arg5[%c0_5, %c0_6] : memref<3x128xf32, #tpu.memory_space<vmem>>, vector<3x128xf32>
    %6 = vector.extract_strided_slice %4 {offsets = [0, 0], sizes = [64, 128], strides = [1, 1]} : vector<72x128xf32> to vector<64x128xf32>
    %7 = vector.extract_strided_slice %5 {offsets = [0, 0], sizes = [1, 128], strides = [1, 1]} : vector<3x128xf32> to vector<1x128xf32>
    %8 = vector.shape_cast %7 : vector<1x128xf32> to vector<128xf32>
    %9 = vector.shape_cast %8 : vector<128xf32> to vector<1x128xf32>
    %10 = vector.broadcast %9 : vector<1x128xf32> to vector<64x128xf32>
    %11 = arith.mulf %6, %10 : vector<64x128xf32>
    %12 = vector.extract_strided_slice %4 {offsets = [2, 0], sizes = [64, 128], strides = [1, 1]} : vector<72x128xf32> to vector<64x128xf32>
    %13 = vector.extract_strided_slice %5 {offsets = [1, 0], sizes = [1, 128], strides = [1, 1]} : vector<3x128xf32> to vector<1x128xf32>
    %14 = vector.shape_cast %13 : vector<1x128xf32> to vector<128xf32>
    %15 = vector.shape_cast %14 : vector<128xf32> to vector<1x128xf32>
    %16 = vector.broadcast %15 : vector<1x128xf32> to vector<64x128xf32>
    %17 = arith.mulf %12, %16 : vector<64x128xf32>
    %18 = arith.addf %11, %17 : vector<64x128xf32>
    %19 = vector.extract_strided_slice %4 {offsets = [4, 0], sizes = [64, 128], strides = [1, 1]} : vector<72x128xf32> to vector<64x128xf32>
    %20 = vector.extract_strided_slice %5 {offsets = [2, 0], sizes = [1, 128], strides = [1, 1]} : vector<3x128xf32> to vector<1x128xf32>
    %21 = vector.shape_cast %20 : vector<1x128xf32> to vector<128xf32>
    %22 = vector.shape_cast %21 : vector<128xf32> to vector<1x128xf32>
    %23 = vector.broadcast %22 : vector<1x128xf32> to vector<64x128xf32>
    %24 = arith.mulf %19, %23 : vector<64x128xf32>
    %25 = arith.addf %18, %24 : vector<64x128xf32>
    %c0_7 = arith.constant 0 : index
    %26 = memref.load %arg2[%c0_7] : memref<1xf32, #tpu.memory_space<smem>>
    %cst = arith.constant 0.000000e+00 : f32
    %27 = vector.broadcast %cst : f32 to vector<64x128xf32>
    %28 = arith.cmpf ogt, %25, %27 : vector<64x128xf32>
    %29 = vector.broadcast %26 : f32 to vector<64x128xf32>
    %30 = arith.mulf %29, %25 : vector<64x128xf32>
    %31 = arith.select %28, %25, %30 : vector<64x128xi1>, vector<64x128xf32>
    %32 = arith.truncf %31 : vector<64x128xf32> to vector<64x128xbf16>
    %c0_8 = arith.constant 0 : index
    %c0_9 = arith.constant 0 : index
    %c0_10 = arith.constant 0 : index
    %33 = vector.load %arg6[%c0_8, %c0_9, %c0_10] : memref<1x128x128xbf16, #tpu.memory_space<vmem>>, vector<1x128x128xbf16>
    %34 = vector.shape_cast %33 : vector<1x128x128xbf16> to vector<128x128xbf16>
    %cst_11 = arith.constant dense<0.000000e+00> : vector<64x128xf32>
    %35 = tpu.matmul %32, %34, %cst_11 {dimension_numbers = #tpu.dot_dimension_numbers<[1], [0], [0], [1], [0, 0, 1, 1], [], []>} : vector<64x128xbf16>, vector<128x128xbf16>, vector<64x128xf32> -> vector<64x128xf32>
    %c0_12 = arith.constant 0 : index
    %c0_13 = arith.constant 0 : index
    %c0_14 = arith.constant 0 : index
    %36 = vector.load %arg7[%c0_12, %c0_13, %c0_14] : memref<1x1x128xf32, #tpu.memory_space<vmem>>, vector<1x1x128xf32>
    %37 = vector.shape_cast %36 : vector<1x1x128xf32> to vector<1x128xf32>
    %38 = vector.broadcast %37 : vector<1x128xf32> to vector<64x128xf32>
    %39 = arith.addf %35, %38 : vector<64x128xf32>
    %c0_15 = arith.constant 0 : index
    %c0_16 = arith.constant 0 : index
    %c0_17 = arith.constant 0 : index
    %40 = vector.load %arg8[%c0_15, %c0_16, %c0_17] : memref<1x64x128xf32, #tpu.memory_space<vmem>>, vector<1x64x128xf32>
    %41 = vector.shape_cast %40 : vector<1x64x128xf32> to vector<64x128xf32>
    %42 = vector.shape_cast %39 : vector<64x128xf32> to vector<1x64x128xf32>
    tpu.vector_store %arg8[%c0_15, %c0_16, %c0_17], %42 {strides = array<i32>} : memref<1x64x128xf32, #tpu.memory_space<vmem>>, vector<1x64x128xf32>,
    return
  }
  func.func @transform_0(%arg0: i32, %arg1: i32) -> i32 {
    %c0_i32 = arith.constant 0 : i32
    %c0_i32_0 = arith.constant 0 : i32
    return %c0_i32 : i32
  }
  func.func @transform_1(%arg0: i32, %arg1: i32) -> (i32, i32, i32) {
    %c0_i32 = arith.constant 0 : i32
    %c0_i32_0 = arith.constant 0 : i32
    return %arg0, %arg1, %c0_i32 : i32, i32, i32
  }
  func.func @transform_2(%arg0: i32, %arg1: i32) -> (i32, i32, i32) {
    %c1_i32 = arith.constant 1 : i32
    %0 = arith.addi %arg1, %c1_i32 : i32
    %c8_i32 = arith.constant 8 : i32
    %1 = arith.muli %0, %c8_i32 : i32
    %c0_i32 = arith.constant 0 : i32
    %c0_i32_0 = arith.constant 0 : i32
    return %arg0, %1, %c0_i32 : i32, i32, i32
  }
  func.func @transform_3(%arg0: i32, %arg1: i32) -> (i32, i32) {
    %c0_i32 = arith.constant 0 : i32
    %c0_i32_0 = arith.constant 0 : i32
    %c0_i32_1 = arith.constant 0 : i32
    return %c0_i32, %c0_i32_0 : i32, i32
  }
  func.func @transform_4(%arg0: i32, %arg1: i32) -> (i32, i32, i32) {
    %c0_i32 = arith.constant 0 : i32
    %c0_i32_0 = arith.constant 0 : i32
    %c0_i32_1 = arith.constant 0 : i32
    return %arg0, %c0_i32, %c0_i32_0 : i32, i32, i32
  }
  func.func @transform_5(%arg0: i32, %arg1: i32) -> (i32, i32, i32) {
    %c0_i32 = arith.constant 0 : i32
    %c0_i32_0 = arith.constant 0 : i32
    %c0_i32_1 = arith.constant 0 : i32
    return %arg0, %c0_i32, %c0_i32_0 : i32, i32, i32
  }
  func.func @transform_6(%arg0: i32, %arg1: i32) -> (i32, i32, i32) {
    %c0_i32 = arith.constant 0 : i32
    %c0_i32_0 = arith.constant 0 : i32
    return %arg0, %arg1, %c0_i32 : i32, i32, i32
  }
}

</mosaic_0001>

<bundles_post_ra>
// kernel: depthwise_separable_conv.2
= control target key start
LH: loop header
LB: loop body
LE: loop exit
PB: predicated region body
PF: predicated region fallthrough
CT: control target
= control target key end

     0   :  { %s757_s17 = smov 0   ;;  %s759_s18 = smov 0   ;;  %s879_s0 = inlined_call_operand.<no memory space> [shape: f32[1], index: 0, kind: input, shape index: {}]   ;;  %s880_s1 = inlined_call_operand.vmem [shape: f32[2,320,128], index: 1, kind: input, shape index: {}, may-alias: {1,2}]   ;;  %s881_s2 = inlined_call_operand.vmem [shape: f32[2,320,128], index: 2, kind: input, shape index: {}, may-alias: {1,2}]   ;;  %s882_s3 = inlined_call_operand.vmem [shape: f32[3,128], index: 3, kind: input, shape index: {}]   ;;  %s883_s4 = inlined_call_operand.vmem [shape: f32[2,2,128], index: 4, kind: output, shape index: {}]  }
   0x1   :  { %9 = sst [smem:[#allocation2]] %s879_s0  ;;  %s761_s19 = smov 0  }
   0x2   :  { %s763_s20 = smov 0   ;;  %s765_s21 = smov 0  }
   0x3 LB: > { %s24_s0 = sadd.s32 1, %s717_s19  ;;  %s27_s22 = sadd.s32 1, %s721_s20  ;;  %s725_s21 = sphi %s765_s21, %s15_s21   ;;  %s721_s20 = sphi %s763_s20, %s887_s20   ;;  %s717_s19 = sphi %s761_s19, %s886_s19   ;;  %s713_s18 = sphi %s759_s18, %s885_s18   ;;  %s709_s17 = sphi %s757_s17, %s884_s17  }
   0x4   : > { %p25_p0 = scmp.ge.s32.totalorder %s24_s0, 4  ;;  %p620_p1 = scmp.ge.s32.totalorder %s725_s21, 1 }
   0x5   : > { %p205_p2 = scmp.lt.s32.totalorder %s725_s21, 9 }
   0x6   : > { %s889_s0 = smov (%p25_p0, %s24_s0), 0  ;;  %s891_s22 = smov (!%p25_p0, %s27_s22), %s721_s20 }
   0x7   : > { %p206_p3 = pnand %p620_p1, %p205_p2  ;;  %p29_p4 = scmp.ge.s32.totalorder %s891_s22, 2 }
   0x8   : > { %s621_s23 = sshll.u32 (!%p206_p3), %s709_s17, 3  ;;  %p245_p5 = scmp.lt.s32.totalorder (!%p206_p3), %s713_s18, 1 }
   0x9   : > { %s893_s22 = smov (%p29_p4, %s891_s22), 0  ;;  %209 = sbr.rel (%p206_p3) target bundleno = 99 (0x63), region = 36 }
   0xa   : > { %p247_p6 = scmp.lt.s32.totalorder (!%p206_p3), %s621_s23, 39  ;;  %s643_s24 = sadd.s32 (!%p206_p3), 8, %s621_s23 }
   0xb   : > { %p258_p7 = scmp.lt.s32.totalorder (!%p206_p3), %s643_s24, 39  ;;  %p626_p8 = scmp.ne.s32.totalorder (!%p206_p3), %s709_s17, 0 }
   0xe   : > { %s895_s18 = smov (!%p245_p5, %s713_s18), 1  ;;  %s897_s23 = smov (!%p247_p6, %s621_s23), 39 }
   0xf   : > { %s644_s25 = smul.u32 40, %s895_s18  ;;  %s625_s26 = sshll.u32 %s895_s18, 1 }
  0x10   : > { %s793_s30 = scalar_lea.vmem %s883_s4, %s625_s26  ;;  %s899_s24 = smov (!%p258_p7, %s643_s24), 39 }
  0x11   : > { %s250_s27 = sadd.s32 %s644_s25, %s897_s23  ;;  %s261_s9 = sadd.s32 %s644_s25, %s899_s24 }
  0x12   : > { %s622_s5 = sshll.u32 %s250_s27, 3  ;;  %s624_s10 = sshll.u32 %s261_s9, 3 }
  0x13   : > { %s252_s8 = scalar_lea.vmem %s880_s1, %s622_s5  ;;  %s263_s13 = scalar_lea.vmem %s881_s2, %s624_s10 }
  0x14   : > { %273 = sbr.rel (%p626_p8) target bundleno = 27 (0x1b), region = 40 }
  0x19   : > { %v727_v0 = vmov 0.0  }
  0x1a   : > { %274 = vst [vmem:[%s793_s30] sm:$0x3] %v727_v0 }
  0x1b PF: > { %v285_v1 = vlaneseq  ;;  %v284_v3 = vld [vmem:[%s882_s3] sm:$0x7]  ;;  %s627_s16 = sshll.u32 %s709_s17, 6  ;;  %v276_v8 = vld [vmem:[%s252_s8 + $0x8] sm:$0xff]  ;;  %v277_v11 = vld [vmem:[%s252_s8 + $0x10] sm:$0xff]  ;;  %vm319_vm0 = vcmask 1045504  }
  0x1c   : > { %v275_v7 = vld [vmem:[%s252_s8] sm:$0xff]  ;;  %v278_v12 = vld [vmem:[%s252_s8 + $0x18] sm:$0xff]  ;;  %v815_v15 = vstv %s627_s16  ;;  %v280_v16 = vld [vmem:[%s252_s8 + $0x28] sm:$0xff]  ;;  %vm375_vm1 = vcmask 1043456   ;;  %s825_s17 = sld [smem:[#allocation2]] }
  0x1d   : > { %v803_v2 = vshrl.u32 %v285_v1, 7  ;;  %v279_v13 = vld [vmem:[%s252_s8 + $0x20] sm:$0xff]  ;;  %v281_v17 = vld [vmem:[%s252_s8 + $0x30] sm:$0xff]  ;;  %v282_v18 = vld [vmem:[%s252_s8 + $0x38] sm:$0xff] }
  0x1e   : > { %v283_v23 = vld [vmem:[%s263_s13] sm:$0xff] }
  0x1f   : > { %v287_v4 = vsub.s32 0, %v803_v2  ;;  %v299_v5 = vsub.s32 1, %v803_v2  ;;  %v355_v6 = vsub.s32 2, %v803_v2  ;;  %v813_v14 = vadd.s32 8, %v803_v2 }
  0x21   : > { %v288_v9 = vrot.slane %v284_v3, %v287_v4  ;;  %v300_v10 = vrot.slane %v284_v3, %v299_v5  ;;  %v356_v22 = vrot.slane %v284_v3, %v355_v6 }
  0x23   : > { %v289_v19 = vmul.f32 %v288_v9, %v275_v7  ;;  %v290_v20 = vmul.f32 %v288_v9, %v276_v8  ;;  %v291_v21 = vmul.f32 %v288_v9, %v277_v11  ;;  %v292_v24 = vmul.f32 %v288_v9, %v278_v12 }
  0x24   : > { %v293_v25 = vmul.f32 %v288_v9, %v279_v13  ;;  %v294_v26 = vmul.f32 %v288_v9, %v280_v16  ;;  %v295_v27 = vmul.f32 %v288_v9, %v281_v17  ;;  %v301_v28 = vmul.f32 %v300_v10, %v275_v7 }
  0x25   : > { %v302_v29 = vmul.f32 %v300_v10, %v276_v8  ;;  %v303_v30 = vmul.f32 %v300_v10, %v277_v11  ;;  %v304_v31 = vmul.f32 %v300_v10, %v278_v12  ;;  %v305_v32 = vmul.f32 %v300_v10, %v279_v13 }
  0x26   : > { %v306_v33 = vmul.f32 %v300_v10, %v280_v16  ;;  %v307_v34 = vmul.f32 %v300_v10, %v281_v17  ;;  %v308_v35 = vmul.f32 %v300_v10, %v282_v18  ;;  %v309_v36 = vmul.f32 %v300_v10, %v283_v23 }
  0x27   : > { %v320_v37 = vrot.slane %v301_v28, 2  ;;  %v321_v38 = vrot.slane %v302_v29, 2  ;;  %v323_v39 = vrot.slane %v303_v30, 2  ;;  %v325_v40 = vrot.slane %v304_v31, 2 }
  0x28   : > { %v327_v41 = vrot.slane %v305_v32, 2  ;;  %v329_v42 = vrot.slane %v306_v33, 2  ;;  %v331_v43 = vrot.slane %v307_v34, 2  ;;  %v333_v46 = vrot.slane %v308_v35, 2 }
  0x29   : > { %v322_v44 = vsel %vm319_vm0, %v320_v37, %v321_v38  ;;  %v324_v45 = vsel %vm319_vm0, %v321_v38, %v323_v39  ;;  %v335_v47 = vrot.slane %v309_v36, 2  ;;  %v326_v48 = vsel %vm319_vm0, %v323_v39, %v325_v40 }
  0x2a   : > { %v328_v49 = vsel %vm319_vm0, %v325_v40, %v327_v41  ;;  %v330_v50 = vsel %vm319_vm0, %v327_v41, %v329_v42  ;;  %v332_v51 = vsel %vm319_vm0, %v329_v42, %v331_v43  ;;  %v296_v52 = vmul.f32 %v288_v9, %v282_v18 }
  0x2b   : > { %v334_v53 = vsel %vm319_vm0, %v331_v43, %v333_v46  ;;  %v336_v54 = vsel %vm319_vm0, %v333_v46, %v335_v47  ;;  %v345_v55 = vadd.f32 %v322_v44, %v289_v19  ;;  %v346_v56 = vadd.f32 %v324_v45, %v290_v20 }
  0x2c   : > { %v347_v57 = vadd.f32 %v326_v48, %v291_v21  ;;  %v348_v58 = vadd.f32 %v328_v49, %v292_v24  ;;  %v349_v59 = vadd.f32 %v330_v50, %v293_v25  ;;  %v350_v60 = vadd.f32 %v332_v51, %v294_v26 }
  0x2d   : > { %v351_v61 = vadd.f32 %v334_v53, %v295_v27  ;;  %v357_v62 = vmul.f32 %v356_v22, %v275_v7  ;;  %v358_v63 = vmul.f32 %v356_v22, %v276_v8  ;;  %v359_v0 = vmul.f32 %v356_v22, %v277_v11 }
  0x2e   : > { %v360_v1 = vmul.f32 %v356_v22, %v278_v12  ;;  %v361_v3 = vmul.f32 %v356_v22, %v279_v13  ;;  %v362_v4 = vmul.f32 %v356_v22, %v280_v16  ;;  %v363_v5 = vmul.f32 %v356_v22, %v281_v17 }
  0x2f   : > { %v364_v6 = vmul.f32 %v356_v22, %v282_v18  ;;  %v365_v9 = vmul.f32 %v356_v22, %v283_v23  ;;  %v376_v10 = vrot.slane %v357_v62, 4  ;;  %v377_v28 = vrot.slane %v358_v63, 4 }
  0x30   : > { %v379_v19 = vrot.slane %v359_v0, 4  ;;  %v381_v20 = vrot.slane %v360_v1, 4  ;;  %v383_v21 = vrot.slane %v361_v3, 4  ;;  %v385_v24 = vrot.slane %v362_v4, 4 }
  0x31   : > { %v387_v25 = vrot.slane %v363_v5, 4  ;;  %v389_v26 = vrot.slane %v364_v6, 4  ;;  %v391_v27 = vrot.slane %v365_v9, 4  ;;  %v378_v7 = vsel %vm375_vm1, %v376_v10, %v377_v28 }
  0x32   : > { %v380_v8 = vsel %vm375_vm1, %v377_v28, %v379_v19  ;;  %v382_v11 = vsel %vm375_vm1, %v379_v19, %v381_v20  ;;  %v384_v12 = vsel %vm375_vm1, %v381_v20, %v383_v21  ;;  %v386_v13 = vsel %vm375_vm1, %v383_v21, %v385_v24 }
  0x33   : > { %v388_v16 = vsel %vm375_vm1, %v385_v24, %v387_v25  ;;  %v390_v17 = vsel %vm375_vm1, %v387_v25, %v389_v26  ;;  %v439_v18 = vadd.s32 16, %v803_v2  ;;  %v352_v22 = vadd.f32 %v336_v54, %v296_v52 }
  0x34   : > { %v401_v23 = vadd.f32 %v378_v7, %v345_v55  ;;  %v402_v29 = vadd.f32 %v380_v8, %v346_v56  ;;  %v440_v30 = vadd.s32 24, %v803_v2  ;;  %v392_v31 = vsel %vm375_vm1, %v389_v26, %v391_v27 }
  0x35   : > { %v403_v32 = vadd.f32 %v382_v11, %v347_v57  ;;  %v404_v33 = vadd.f32 %v384_v12, %v348_v58  ;;  %v441_v34 = vadd.s32 32, %v803_v2  ;;  %v405_v35 = vadd.f32 %v386_v13, %v349_v59 }
  0x36   : > { %v406_v36 = vadd.f32 %v388_v16, %v350_v60  ;;  %v407_v37 = vadd.f32 %v390_v17, %v351_v61  ;;  %v418_v38 = vstv %s825_s17  ;;  %v442_v39 = vadd.s32 40, %v803_v2 }
  0x37   : > { %v443_v40 = vadd.s32 48, %v803_v2  ;;  %v444_v41 = vadd.s32 56, %v803_v2  ;;  %v446_v42 = vadd.s32 %v815_v15, %v803_v2  ;;  %v408_v43 = vadd.f32 %v392_v31, %v352_v22 }
  0x38   : > { %vm410_vm2 = vcmp.gt.f32.partialorder %v401_v23, 0.0  ;;  %vm411_vm3 = vcmp.gt.f32.partialorder %v402_v29, 0.0  ;;  %v447_v44 = vadd.s32 %v815_v15, %v813_v14  ;;  %vm412_vm4 = vcmp.gt.f32.partialorder %v403_v32, 0.0 }
  0x39   : > { %vm413_vm5 = vcmp.gt.f32.partialorder %v404_v33, 0.0  ;;  %v419_v45 = vmul.f32 %v418_v38, %v401_v23  ;;  %v420_v46 = vmul.f32 %v418_v38, %v402_v29  ;;  %vm414_vm6 = vcmp.gt.f32.partialorder %v405_v35, 0.0 }
  0x3a   : > { %vm415_vm7 = vcmp.gt.f32.partialorder %v406_v36, 0.0  ;;  %vm416_vm8 = vcmp.gt.f32.partialorder %v407_v37, 0.0  ;;  %v421_v47 = vmul.f32 %v418_v38, %v403_v32  ;;  %v422_v48 = vmul.f32 %v418_v38, %v404_v33 }
  0x3b   : > { %v423_v49 = vmul.f32 %v418_v38, %v405_v35  ;;  %v424_v50 = vmul.f32 %v418_v38, %v406_v36  ;;  %v425_v51 = vmul.f32 %v418_v38, %v407_v37  ;;  %vm417_vm9 = vcmp.gt.f32.partialorder %v408_v43, 0.0 }
  0x3c   : > { %v448_v2 = vadd.s32 %v815_v15, %v439_v18  ;;  %v449_v52 = vadd.s32 %v815_v15, %v440_v30  ;;  %v450_v53 = vadd.s32 %v815_v15, %v441_v34  ;;  %v451_v14 = vadd.s32 %v815_v15, %v442_v39 }
  0x3d   : > { %v427_v54 = vsel %vm410_vm2, %v401_v23, %v419_v45  ;;  %v428_v55 = vsel %vm411_vm3, %v402_v29, %v420_v46  ;;  %vm454_vm10 = vcmp.lt.s32.totalorder %v446_v42, 256  ;;  %vm455_vm11 = vcmp.lt.s32.totalorder %v447_v44, 256 }
  0x3e   : > { %v452_v56 = vadd.s32 %v815_v15, %v443_v40  ;;  %vm456_vm12 = vcmp.lt.s32.totalorder %v448_v2, 256  ;;  %vm457_vm13 = vcmp.lt.s32.totalorder %v449_v52, 256  ;;  %vm458_vm14 = vcmp.lt.s32.totalorder %v450_v53, 256 }
  0x3f   : > { %v429_v57 = vsel %vm412_vm4, %v403_v32, %v421_v47  ;;  %v430_v58 = vsel %vm413_vm5, %v404_v33, %v422_v48  ;;  %v728_v59 = vmov 0.0   ;;  %v453_v62 = vadd.s32 %v815_v15, %v444_v41 }
  0x40   : > { %v628_v60 = vsel %vm454_vm10, 1.0, %v728_v59  ;;  %v629_v61 = vsel %vm455_vm11, 1.0, %v728_v59  ;;  %vm459_vm15 = vcmp.lt.s32.totalorder %v451_v14, 256  ;;  %v630_v63 = vsel %vm456_vm12, 1.0, %v728_v59  ;;  %v523_v14 = vld [vmem:[%s793_s30 + $0x1] sm:$0x1] }
  0x41   : > { %v631_v0 = vsel %vm457_vm13, 1.0, %v728_v59  ;;  %v431_v1 = vsel %vm414_vm6, %v405_v35, %v423_v49  ;;  %v632_v3 = vsel %vm458_vm14, 1.0, %v728_v59  ;;  %v478_v4 = vmul.f32 %v628_v60, %v427_v54 }
  0x42   : > { %v479_v5 = vmul.f32 %v629_v61, %v428_v55  ;;  %v426_v6 = vmul.f32 %v418_v38, %v408_v43  ;;  %vm460_vm0 = vcmp.lt.s32.totalorder %v452_v56, 256  ;;  %v480_v9 = vmul.f32 %v630_v63, %v429_v57 }
  0x43   : > { %v481_v10 = vmul.f32 %v631_v0, %v430_v58  ;;  %v432_v28 = vsel %vm415_vm7, %v406_v36, %v424_v50  ;;  %v633_v19 = vsel %vm459_vm15, 1.0, %v728_v59  ;;  %v499_v21 = vmul.f32 %v478_v4, %v478_v4 }
  0x44   : > { %v486_v20 = vadd.f32 %v479_v5, %v478_v4  ;;  %vm461_vm1 = vcmp.lt.s32.totalorder %v453_v62, 256  ;;  %v482_v24 = vmul.f32 %v632_v3, %v431_v1  ;;  %v500_v15 = vmul.f32 %v479_v5, %v479_v5 }
  0x45   : > { %v501_v25 = vmul.f32 %v480_v9, %v480_v9  ;;  %v433_v26 = vsel %vm416_vm8, %v407_v37, %v425_v51  ;;  %v634_v27 = vsel %vm460_vm0, 1.0, %v728_v59  ;;  %v483_v8 = vmul.f32 %v633_v19, %v432_v28  ;;  %v520_v51 = vld [vmem:[%s793_s30] sm:$0x1] }
  0x46   : > { %v487_v7 = vadd.f32 %v486_v20, %v480_v9  ;;  %v502_v11 = vmul.f32 %v481_v10, %v481_v10  ;;  %v507_v12 = vadd.f32 %v500_v15, %v499_v21  ;;  %v434_v13 = vsel %vm417_vm9, %v408_v43, %v426_v6 }
  0x47   : > { %v635_v16 = vsel %vm461_vm1, 1.0, %v728_v59  ;;  %v484_v18 = vmul.f32 %v634_v27, %v433_v26  ;;  %v503_v22 = vmul.f32 %v482_v24, %v482_v24  ;;  %v504_v31 = vmul.f32 %v483_v8, %v483_v8 }
  0x48   : > { %v488_v17 = vadd.f32 %v487_v7, %v481_v10  ;;  %v508_v23 = vadd.f32 %v507_v12, %v501_v25  ;;  %v485_v30 = vmul.f32 %v635_v16, %v434_v13 }
  0x49   : > { %v505_v34 = vmul.f32 %v484_v18, %v484_v18 }
  0x4a   : > { %v489_v29 = vadd.f32 %v488_v17, %v482_v24  ;;  %v509_v32 = vadd.f32 %v508_v23, %v502_v11  ;;  %v506_v37 = vmul.f32 %v485_v30, %v485_v30 }
  0x4c   : > { %v490_v33 = vadd.f32 %v489_v29, %v483_v8  ;;  %v510_v35 = vadd.f32 %v509_v32, %v503_v22 }
  0x4e   : > { %v491_v36 = vadd.f32 %v490_v33, %v484_v18  ;;  %v511_v38 = vadd.f32 %v510_v35, %v504_v31 }
  0x50   : > { %v492_v39 = vadd.f32 %v491_v36, %v485_v30  ;;  %v512_v40 = vadd.f32 %v511_v38, %v505_v34 }
  0x52   : > { %v493_v41 = vrot.slane %v492_v39, 4  ;;  %v513_v42 = vadd.f32 %v512_v40, %v506_v37 }
  0x54   : > { %v494_v43 = vadd.f32 %v493_v41, %v492_v39  ;;  %v514_v44 = vrot.slane %v513_v42, 4 }
  0x56   : > { %v495_v45 = vrot.slane %v494_v43, 2  ;;  %v515_v46 = vadd.f32 %v514_v44, %v513_v42 }
  0x58   : > { %v496_v47 = vadd.f32 %v495_v45, %v494_v43  ;;  %v516_v48 = vrot.slane %v515_v46, 2 }
  0x5a   : > { %v497_v49 = vrot.slane %v496_v47, 1  ;;  %v517_v50 = vadd.f32 %v516_v48, %v515_v46 }
  0x5c   : > { %v498_v2 = vadd.f32 %v497_v49, %v496_v47  ;;  %v518_v52 = vrot.slane %v517_v50, 1 }
  0x5e   : > { %v521_v53 = vadd.f32 %v520_v51, %v498_v2  ;;  %v519_v54 = vadd.f32 %v518_v52, %v517_v50 }
  0x60   : > { %522 = vst [vmem:[%s793_s30] sm:$0x1] %v521_v53  ;;  %v524_v55 = vadd.f32 %v523_v14, %v519_v54 }
  0x62   : > { %525 = vst [vmem:[%s793_s30 + $0x1] sm:$0x1] %v524_v55 }
  0x63 PF: > { %s15_s21 = sadd.s32 1, %s725_s21   ;;  %s884_s17 = smov %s717_s19 }
  0x64   : > { %p12_p9 = scmp.ge.s32.totalorder %s15_s21, 10   ;;  %s885_s18 = smov %s721_s20 }
  0x65   : > { %s886_s19 = smov %s889_s0  ;;  %s887_s20 = smov %s893_s22 }
  0x66   :  { %14 = sbr.rel (!%p12_p9) target bundleno = 3 (0x3), region = 73 }

// kernel: depthwise_separable_conv.3
= control target key start
LH: loop header
LB: loop body
LE: loop exit
PB: predicated region body
PF: predicated region fallthrough
CT: control target
= control target key end

     0   :  { %s1411_s0 = inlined_call_operand.<no memory space> [shape: f32[1], index: 0, kind: input, shape index: {}]   ;;  %s1412_s1 = inlined_call_operand.vmem [shape: f32[2,320,128], index: 1, kind: input, shape index: {}, may-alias: {1,2}]   ;;  %s1413_s2 = inlined_call_operand.vmem [shape: f32[2,320,128], index: 2, kind: input, shape index: {}, may-alias: {1,2}]   ;;  %s1414_s3 = inlined_call_operand.vmem [shape: f32[3,128], index: 3, kind: input, shape index: {}]   ;;  %s1415_s4 = inlined_call_operand.vmem [shape: bf16[2,128,128], index: 4, kind: input, shape index: {}]   ;;  %s1416_s5 = inlined_call_operand.vmem [shape: f32[2,1,128], index: 5, kind: input, shape index: {}]   ;;  %s1417_s6 = inlined_call_operand.hbm [shape: f32[2,256,128], index: 6, kind: output, shape index: {}]  }
   0x1   :  { %11 = sst [smem:[#allocation2]] %s1411_s0 }
   0x2   :  { %12 = vsyncpa [#allocation4], 0 }
   0x3   :  { %14 = vsyncpa [#allocation4 + $0x1], 0  ;;  %s1112_s23 = smov 0   ;;  %s1114_s24 = smov 0  }
   0x4   :  { %s1116_s25 = smov 0   ;;  %s1118_s26 = smov 0  }
   0x5   :  { %s1120_s27 = smov 0   ;;  %s1122_s28 = smov 0  }
   0x6   :  { %s1124_s29 = smov 0   ;;  %s1126_s30 = smov 0  }
   0x7 LB: > { %s807_s0 = sadd.s32 4294967295, %s1069_s30   ;;  %s808_s7 = sadd.s32 4294967294, %s1069_s30   ;;  %s1069_s30 = sphi %s1126_s30, %s20_s30   ;;  %s1065_s29 = sphi %s1124_s29, %s1427_s29   ;;  %s1061_s28 = sphi %s1122_s28, %s1426_s28   ;;  %s1057_s27 = sphi %s1120_s27, %s1425_s27   ;;  %s1053_s26 = sphi %s1118_s26, %s1424_s26   ;;  %s1049_s25 = sphi %s1116_s25, %s1423_s25   ;;  %s1045_s24 = sphi %s1114_s24, %s1422_s24   ;;  %s1041_s23 = sphi %s1112_s23, %s1421_s23  }
   0x8   : > { %s29_s8 = sadd.s32 1, %s1061_s28  ;;  %s32_s9 = sadd.s32 1, %s1065_s29 }
   0x9   : > { %p30_p0 = scmp.ge.s32.totalorder %s29_s8, 4  ;;  %p205_p1 = scmp.ne.s32.totalorder %s1049_s25, %s1045_s24 }
   0xa   : > { %p206_p2 = scmp.eq.s32.totalorder %s807_s0, 7  ;;  %p211_p5 = scmp.ne.s32.totalorder %s1045_s24, %s1041_s23 }
   0xb   : > { %s1429_s8 = smov (%p30_p0, %s29_s8), 0  ;;  %s1431_s9 = smov (!%p30_p0, %s32_s9), %s1065_s29 }
   0xc   : > { %s191_s10 = ssub.s32 %s1061_s28, %s1429_s8  ;;  %p1163_p3 = por %p206_p2, %p205_p1 }
   0xd   : > { %p34_p4 = scmp.ge.s32.totalorder %s1431_s9, 2  ;;  %p212_p6 = scmp.eq.s32.totalorder %s808_s7, 7 }
   0xe   : > { %p813_p7 = scmp.ge.s32.totalorder %s1069_s30, 1  ;;  %p278_p9 = scmp.lt.s32.totalorder %s1069_s30, 9 }
   0xf   : > { %s1433_s9 = smov (%p34_p4, %s1431_s9), 0  ;;  %p1172_p8 = por %p212_p6, %p211_p5 }
  0x10   : > { %s190_s13 = ssub.s32 %s1065_s29, %s1433_s9  ;;  %s195_s14 = sadd.s32 1, %s1049_s25 }
  0x11   : > { %s192_s15 = sor.u32 %s191_s10, %s190_s13  ;;  %p279_p10 = pnand %p813_p7, %p278_p9 }
  0x12   : > { %p193_p11 = scmp.eq.s32.totalorder %s192_s15, 0  ;;  %p331_p12 = scmp.lt.s32.totalorder (!%p279_p10), %s1057_s27, 1 }
  0x13   : > { %282 = sbr.rel (%p279_p10) target bundleno = 279 (0x117), region = 44  ;;  %s1185_s17 = sshll.u32 (!%p279_p10), %s1053_s26, 3 }
  0x14   : > { %s1181_s16 = scalar_select %p193_p11, %s1049_s25, %s195_s14  }
  0x15   : > { %p333_p13 = scmp.lt.s32.totalorder (!%p279_p10), %s1185_s17, 39  ;;  %s1199_s26 = sld [smem:[#allocation2]] (!%p279_p10) }
  0x18   : > { %v372_v0 = vlaneseq  ;;  %s1189_s18 = scalar_select %p331_p12, %s1057_s27, 1  ;;  %v371_v3 = vld [vmem:[%s1414_s3] sm:$0x7]  ;;  %vm406_vm0 = vcmask 1045504   ;;  %vm462_vm1 = vcmask 1043456  }
  0x19   : > { %s334_s19 = scalar_select %p333_p13, %s1185_s17, 39 }
  0x1a   : > { %v373_v1 = vshrl.u32 %v372_v0, 7  ;;  %s842_s20 = sshll.u32 %s1189_s18, 6  ;;  %s895_s21 = smul.u32 40, %s1189_s18 }
  0x1b   : > { %s1197_s7 = scalar_lea.vmem %s1415_s4, %s842_s20  ;;  %s841_s20 = sadd.s32 8, %s1185_s17  ;;  %v1232_v16 = vstv %s1199_s26 }
  0x1c   : > { %v969_v2 = vld [vmem:[%s1197_s7 + $0x38] sm:$0xff]   ;;  %s336_s10 = sadd.s32 %s895_s21, %s334_s19  ;;  %v374_v4 = vsub.s32 0, %v373_v1  ;;  %v970_v5 = vld [vmem:[%s1197_s7 + $0x30] sm:$0xff]   ;;  %v386_v6 = vsub.s32 1, %v373_v1  ;;  %v442_v7 = vsub.s32 2, %v373_v1  ;;  %v971_v8 = vld [vmem:[%s1197_s7 + $0x28] sm:$0xff]   ;;  %s359_s22 = scalar_lea.vmem %s1416_s5, %s1189_s18 }
  0x1d   : > { %855 = vmatprep.subr.bf16.mxu0 %v969_v2  ;;  %879 = vmatprep.subr.bf16.mxu1 %v969_v2  ;;  %s816_s15 = sshll.u32 %s336_s10, 3  ;;  %p1210_p0 = scmp.lt.s32.totalorder %s841_s20, 39  ;;  %v972_v12 = vld [vmem:[%s1197_s7 + $0x20] sm:$0xff]   ;;  %v973_v32 = vld [vmem:[%s1197_s7 + $0x18] sm:$0xff]   ;;  %v974_v49 = vld [vmem:[%s1197_s7 + $0x10] sm:$0xff]  }
  0x1e   : > { %856 = vmatpush3.bf16.msra.mxu0 %v969_v2  ;;  %887 = vmatpush3.bf16.msra.mxu1 %v969_v2  ;;  %s1217_s13 = scalar_lea.vmem %s1412_s1, %s816_s15  ;;  %v1219_v9 = vrot.slane %v371_v3, %v374_v4  ;;  %v1221_v10 = vrot.slane %v371_v3, %v386_v6  ;;  %v1223_v11 = vrot.slane %v371_v3, %v442_v7  ;;  %v975_v0 = vld [vmem:[%s1197_s7 + $0x8] sm:$0xff]   ;;  %s1071_s19 = smov [#allocation3]  }
  0x1f   : > { %857 = vmatprep.subr.bf16.mxu0 %v970_v5  ;;  %880 = vmatprep.subr.bf16.mxu1 %v970_v5  ;;  %v362_v13 = vld [vmem:[%s1217_s13] sm:$0xff]  ;;  %v363_v14 = vld [vmem:[%s1217_s13 + $0x8] sm:$0xff]  ;;  %v1229_v15 = vld [vmem:[%s1217_s13 + $0x10] sm:$0xff]  ;;  %s1435_s20 = smov (!%p1210_p0, %s841_s20), 39 }
  0x20   : > { %v376_v17 = vmul.f32 %v1219_v9, %v362_v13  ;;  %v377_v18 = vmul.f32 %v1219_v9, %v363_v14  ;;  %v388_v19 = vmul.f32 %v1221_v10, %v362_v13  ;;  %v389_v20 = vmul.f32 %v1221_v10, %v363_v14  ;;  %v366_v25 = vld [vmem:[%s1217_s13 + $0x20] sm:$0xff]  ;;  %v367_v26 = vld [vmem:[%s1217_s13 + $0x28] sm:$0xff]  ;;  %v1253_v27 = vld [vmem:[%s1217_s13 + $0x30] sm:$0xff]  ;;  %s1262_s26 = sadd.s32 %s895_s21, %s1435_s20 }
  0x21   : > { %v1242_v21 = vmul.f32 %v1221_v10, %v1229_v15  ;;  %v444_v22 = vmul.f32 %v1223_v11, %v362_v13  ;;  %v445_v23 = vmul.f32 %v1223_v11, %v363_v14  ;;  %v1248_v24 = vmul.f32 %v1223_v11, %v1229_v15  ;;  %s818_s21 = sshll.u32 %s1262_s26, 3  ;;  %v365_v60 = vld [vmem:[%s1217_s13 + $0x18] sm:$0xff] }
  0x22   : > { %858 = vmatpush3.bf16.msra.mxu0 %v970_v5  ;;  %888 = vmatpush3.bf16.msra.mxu1 %v970_v5  ;;  %v407_v28 = vrot.slane %v388_v19, 2  ;;  %v408_v29 = vrot.slane %v389_v20, 2  ;;  %v380_v30 = vmul.f32 %v1219_v9, %v366_v25  ;;  %v381_v31 = vmul.f32 %v1219_v9, %v367_v26  ;;  %s349_s15 = scalar_lea.vmem %s1413_s2, %s818_s21 }
  0x23   : > { %859 = vmatprep.subr.bf16.mxu0 %v971_v8  ;;  %881 = vmatprep.subr.bf16.mxu1 %v971_v8  ;;  %v410_v33 = vrot.slane %v1242_v21, 2  ;;  %v463_v34 = vrot.slane %v444_v22, 4  ;;  %v464_v35 = vrot.slane %v445_v23, 4  ;;  %v466_v36 = vrot.slane %v1248_v24, 4  ;;  %v370_v13 = vld [vmem:[%s349_s15] sm:$0xff] }
  0x24   : > { %v409_v37 = vsel %vm406_vm0, %v407_v28, %v408_v29  ;;  %v1266_v38 = vmul.f32 %v1221_v10, %v366_v25  ;;  %v393_v39 = vmul.f32 %v1221_v10, %v367_v26  ;;  %v1271_v40 = vmul.f32 %v1221_v10, %v1253_v27 }
  0x25   : > { %v411_v41 = vsel %vm406_vm0, %v408_v29, %v410_v33  ;;  %v432_v42 = vadd.f32 %v409_v37, %v376_v17  ;;  %v465_v43 = vsel %vm462_vm1, %v463_v34, %v464_v35  ;;  %v467_v44 = vsel %vm462_vm1, %v464_v35, %v466_v36 }
  0x26   : > { %860 = vmatpush3.bf16.msra.mxu0 %v971_v8  ;;  %889 = vmatpush3.bf16.msra.mxu1 %v971_v8  ;;  %v433_v45 = vadd.f32 %v411_v41, %v377_v18  ;;  %v414_v46 = vrot.slane %v1266_v38, 2  ;;  %v416_v47 = vrot.slane %v393_v39, 2  ;;  %v418_v48 = vrot.slane %v1271_v40, 2 }
  0x27   : > { %861 = vmatprep.subr.bf16.mxu0 %v972_v12  ;;  %882 = vmatprep.subr.bf16.mxu1 %v972_v12  ;;  %v488_v50 = vadd.f32 %v465_v43, %v432_v42  ;;  %v448_v51 = vmul.f32 %v1223_v11, %v366_v25  ;;  %v449_v52 = vmul.f32 %v1223_v11, %v367_v26  ;;  %v976_v25 = vld [vmem:[%s1197_s7] sm:$0xff]   ;;  %s327_s7 = sand.u32 1, %s1045_s24  }
  0x28   : > { %v489_v53 = vadd.f32 %v467_v44, %v433_v45  ;;  %v417_v54 = vsel %vm406_vm0, %v414_v46, %v416_v47  ;;  %v419_v55 = vsel %vm406_vm0, %v416_v47, %v418_v48  ;;  %v1292_v56 = vmul.f32 %v1223_v11, %v1253_v27  ;;  %s814_s0 = sshll.u32 %s327_s7, 6  ;;  %s1360_s15 = scalar_lea.sflag [#allocation4], %s327_s7 }
  0x29   : > { %vm497_vm2 = vcmp.gt.f32.partialorder %v488_v50, 0.0  ;;  %v506_v57 = vmul.f32 %v1232_v16, %v488_v50  ;;  %v436_v58 = vadd.f32 %v417_v54, %v380_v30  ;;  %v437_v59 = vadd.f32 %v419_v55, %v381_v31  ;;  %s329_s26 = scalar_lea.vmem [#allocation3], %s814_s0 }
  0x2a   : > { %862 = vmatpush3.bf16.msra.mxu0 %v972_v12  ;;  %890 = vmatpush3.bf16.msra.mxu1 %v972_v12  ;;  %vm498_vm3 = vcmp.gt.f32.partialorder %v489_v53, 0.0  ;;  %v507_v61 = vmul.f32 %v1232_v16, %v489_v53  ;;  %v470_v62 = vrot.slane %v448_v51, 4  ;;  %v472_v63 = vrot.slane %v449_v52, 4  ;;  %v369_v12 = vld [vmem:[%s1217_s13 + $0x38] sm:$0xff]  ;;  %s832_s13 = sshll.u32 %s1057_s27, 5  ;;  %s686_s27 = sshll.u32 %s329_s26, 4  ;;  %s1356_s27 = int_to_ptr.vmem [resolvable:$true] %s686_s27 }
  0x2b   : > { %863 = vmatprep.subr.bf16.mxu0 %v973_v32  ;;  %883 = vmatprep.subr.bf16.mxu1 %v973_v32  ;;  %v514_v1 = vsel %vm497_vm2, %v488_v50, %v506_v57  ;;  %v474_v2 = vrot.slane %v1292_v56, 4  ;;  %v378_v3 = vmul.f32 %v1219_v9, %v1229_v15  ;;  %v379_v4 = vmul.f32 %v1219_v9, %v365_v60  ;;  %v821_v56 = vld [vmem:[%s359_s22] ss:$0 sm:$0xff]  ;;  %s683_s21 = sadd.s32 %s832_s13, %s1185_s17  ;;  %s977_s20 = scalar_lea.vmem %s1356_s27, 1024 }
  0x2c   : > { %v515_v5 = vsel %vm498_vm3, %v489_v53, %v507_v61  ;;  %v473_v6 = vsel %vm462_vm1, %v470_v62, %v472_v63  ;;  %v391_v7 = vmul.f32 %v1221_v10, %v365_v60  ;;  %v447_v8 = vmul.f32 %v1223_v11, %v365_v60  ;;  %s833_s18 = sshll.u32 %s683_s21, 7  ;;  %p978_p1 = scmp.ne.s32.totalorder %s1356_s27, %s977_s20 }
  0x2d   : > { %v522_v14 = vpack.c.bf16 %v515_v5, %v514_v1  ;;  %v475_v17 = vsel %vm462_vm1, %v472_v63, %v474_v2  ;;  %v492_v18 = vadd.f32 %v473_v6, %v436_v58  ;;  %v382_v15 = vmul.f32 %v1219_v9, %v1253_v27  ;;  %s1354_s17 = scalar_lea.hbm %s1417_s6, %s833_s18  ;;  %s981_s22 = sshll.u32 %s1071_s19, 4  ;;  %s982_s22 = int_to_ptr.vmem [resolvable:$false] %s981_s22 }
  0x2e   : > { %864 = vmatpush3.bf16.msra.mxu0 %v973_v32  ;;  %891 = vmatpush3.bf16.msra.mxu1 %v973_v32  ;;  %v493_v19 = vadd.f32 %v475_v17, %v437_v59  ;;  %v412_v20 = vrot.slane %v391_v7, 2  ;;  %v468_v22 = vrot.slane %v447_v8, 4  ;;  %v383_v23 = vmul.f32 %v1219_v9, %v369_v12  ;;  %p979_p2 = pnand %p978_p1, %p1163_p3  ;;  %s983_s0 = scalar_lea.vmem %s982_s22, 2048 }
  0x2f   : > { %865 = vmatprep.subr.bf16.mxu0 %v974_v49  ;;  %884 = vmatprep.subr.bf16.mxu1 %v974_v49  ;;  %vm501_vm4 = vcmp.gt.f32.partialorder %v492_v18, 0.0  ;;  %v510_v26 = vmul.f32 %v1232_v16, %v492_v18  ;;  %v395_v28 = vmul.f32 %v1221_v10, %v369_v12  ;;  %v396_v29 = vmul.f32 %v1221_v10, %v370_v13  ;;  %p984_p5 = scmp.lt.s32.totalorder %s1356_s27, %s982_s22  ;;  %p985_p6 = scmp.lt.s32.totalorder %s983_s0, %s977_s20 }
  0x30   : > { %871 = vmatprep.mubr.bf16.mxu0 %v522_v14  ;;  %vm502_vm5 = vcmp.gt.f32.partialorder %v493_v19, 0.0  ;;  %v511_v27 = vmul.f32 %v1232_v16, %v493_v19  ;;  %v413_v30 = vsel %vm406_vm0, %v410_v33, %v412_v20  ;;  %v415_v9 = vsel %vm406_vm0, %v412_v20, %v414_v46  ;;  %p980_p4 = pneg %p979_p2 }
  0x31   : > { %v518_v31 = vsel %vm501_vm4, %v492_v18, %v510_v26  ;;  %v434_v32 = vadd.f32 %v413_v30, %v378_v3  ;;  %v435_v34 = vadd.f32 %v415_v9, %v379_v4  ;;  %v469_v35 = vsel %vm462_vm1, %v466_v36, %v468_v22  ;;  %p986_p7 = por %p985_p6, %p984_p5 }
  0x32   : > { %866 = vmatpush3.bf16.msra.mxu0 %v974_v49  ;;  %892 = vmatpush3.bf16.msra.mxu1 %v974_v49  ;;  %v519_v10 = vsel %vm502_vm5, %v493_v19, %v511_v27  ;;  %v471_v37 = vsel %vm462_vm1, %v468_v22, %v470_v62  ;;  %v420_v38 = vrot.slane %v395_v28, 2  ;;  %v422_v39 = vrot.slane %v396_v29, 2 }
  0x33   : > { %867 = vmatprep.subr.bf16.mxu0 %v975_v0  ;;  %885 = vmatprep.subr.bf16.mxu1 %v975_v0  ;;  %v524_v21 = vpack.c.bf16 %v519_v10, %v518_v31  ;;  %v490_v33 = vadd.f32 %v469_v35, %v434_v32  ;;  %v491_v41 = vadd.f32 %v471_v37, %v435_v34  ;;  %p987_p9 = pnand %p986_p7, %p980_p4 }
  0x34   : > { %v421_v42 = vsel %vm406_vm0, %v418_v48, %v420_v38  ;;  %v423_v24 = vsel %vm406_vm0, %v420_v38, %v422_v39  ;;  %v451_v36 = vmul.f32 %v1223_v11, %v369_v12  ;;  %v452_v43 = vmul.f32 %v1223_v11, %v370_v13 }
  0x35   : > { %875 = vmatprep.mubr.bf16.mxu1 %v524_v21  ;;  %vm499_vm6 = vcmp.gt.f32.partialorder %v490_v33, 0.0  ;;  %vm500_vm7 = vcmp.gt.f32.partialorder %v491_v41, 0.0  ;;  %v508_v44 = vmul.f32 %v1232_v16, %v490_v33  ;;  %v509_v45 = vmul.f32 %v1232_v16, %v491_v41 }
  0x36   : > { %868 = vmatpush3.bf16.msra.mxu0 %v975_v0  ;;  %893 = vmatpush3.bf16.msra.mxu1 %v975_v0  ;;  %v438_v46 = vadd.f32 %v421_v42, %v382_v15  ;;  %v439_v47 = vadd.f32 %v423_v24, %v383_v23  ;;  %v476_v40 = vrot.slane %v451_v36, 4  ;;  %v478_v49 = vrot.slane %v452_v43, 4 }
  0x37   : > { %869 = vmatprep.subr.bf16.mxu0 %v976_v25  ;;  %886 = vmatprep.subr.bf16.mxu1 %v976_v25  ;;  %v516_v48 = vsel %vm499_vm6, %v490_v33, %v508_v44  ;;  %v517_v50 = vsel %vm500_vm7, %v491_v41, %v509_v45 }
  0x38   : > { %v523_v51 = vpack.c.bf16 %v517_v50, %v516_v48  ;;  %v477_v11 = vsel %vm462_vm1, %v474_v2, %v476_v40  ;;  %v479_v52 = vsel %vm462_vm1, %v476_v40, %v478_v49 }
  0x39   : > { %v494_v53 = vadd.f32 %v477_v11, %v438_v46  ;;  %v495_v54 = vadd.f32 %v479_v52, %v439_v47 }
  0x3a   : > { %870 = vmatpush3.bf16.msra.mxu0 %v976_v25  ;;  %894 = vmatpush3.bf16.msra.mxu1 %v976_v25 }
  0x3b   : > { %vm503_vm8 = vcmp.gt.f32.partialorder %v494_v53, 0.0  ;;  %vm504_vm9 = vcmp.gt.f32.partialorder %v495_v54, 0.0  ;;  %v512_v55 = vmul.f32 %v1232_v16, %v494_v53  ;;  %v513_v57 = vmul.f32 %v1232_v16, %v495_v54 }
  0x3d   : > { %872 = vmatmul.mubr.bf16.vlgmr.msra.gmra.mxu0 %v523_v51  ;;  %v520_v58 = vsel %vm503_vm8, %v494_v53, %v512_v55  ;;  %v521_v59 = vsel %vm504_vm9, %v495_v54, %v513_v57 }
  0x3e   : > { %v525_v60 = vpack.c.bf16 %v521_v59, %v520_v58 }
  0x40   : > { %876 = vmatmul.mubr.bf16.vlgmr.msra.gmra.mxu1 %v525_v60 }
  0xfd   : > { %v873_v61 = vpop.f32.mrf.mxu0 }
  0xfe   : > { %v640_v62 = vadd.f32 %v873_v61, %v821_v56 }
  0xff   : > { %v631_v63 = vpop.f32.mrf.mxu0 }
 0x100   : > { %664 = vst [vmem:[%s329_s26 + $0x10] sm:$0xff] %v640_v62  ;;  %v632_v16 = vadd.f32 %v821_v56, %v631_v63  ;;  %v877_v2 = vpop.f32.mrf.mxu1 }
 0x101   : > { %v874_v0 = vpop.f32.mrf.mxu0  ;;  %v656_v4 = vadd.f32 %v877_v2, %v821_v56 }
 0x102   : > { %662 = vst [vmem:[%s329_s26] sm:$0xff] %v632_v16  ;;  %v643_v1 = vadd.f32 %v874_v0, %v821_v56  ;;  %v647_v6 = vpop.f32.mrf.mxu1 }
 0x103   : > { %v634_v3 = vpop.f32.mrf.mxu0  ;;  %668 = vst [vmem:[%s329_s26 + $0x30] sm:$0xff] %v656_v4  ;;  %v648_v7 = vadd.f32 %v821_v56, %v647_v6 }
 0x104   : > { %665 = vst [vmem:[%s329_s26 + $0x18] sm:$0xff] %v643_v1  ;;  %v635_v5 = vadd.f32 %v821_v56, %v634_v3  ;;  %v878_v8 = vpop.f32.mrf.mxu1 }
 0x105   : > { %666 = vst [vmem:[%s329_s26 + $0x20] sm:$0xff] %v648_v7  ;;  %v659_v12 = vadd.f32 %v878_v8, %v821_v56 }
 0x106   : > { %663 = vst [vmem:[%s329_s26 + $0x8] sm:$0xff] %v635_v5  ;;  %v650_v13 = vpop.f32.mrf.mxu1 }
 0x107   : > { %669 = vst [vmem:[%s329_s26 + $0x38] sm:$0xff] %v659_v12  ;;  %v651_v14 = vadd.f32 %v821_v56, %v650_v13 }
 0x109   : > { %667 = vst [vmem:[%s329_s26 + $0x28] sm:$0xff] %v651_v14 }
 0x10a   : > { %990 = shalt.err (!%p987_p9)
}
 0x10b   : > { %s991_s7 = scalar_lea.hbm %s1354_s17, 1024  ;;  %s995_s21 = scalar_lea.hbm %s1417_s6, 8192 }
 0x10c   : > { %p992_p10 = scmp.ne.s32.totalorder %s1354_s17, %s991_s7  ;;  %p996_p13 = scmp.lt.s32.totalorder %s1354_s17, %s1417_s6 }
 0x10d   : > { %p997_p0 = scmp.lt.s32.totalorder %s995_s21, %s991_s7 }
 0x10e   : > { %p993_p11 = pnand %p992_p10, %p1163_p3 }
 0x10f   : > { %p998_p1 = por %p997_p0, %p996_p13 }
 0x110   : > { %p994_p12 = pneg %p993_p11 }
 0x112   : > { %p999_p2 = pnand %p998_p1, %p994_p12 }
 0x114   : > { %1002 = shalt.err (!%p999_p2)
}
 0x115   : > { %s1072_s14 = smov 128   ;;  %s1073_s20 = smov 8  }
 0x116   : > { %896 = dma.vmem_to_hbm [thread:$0]  (%p1163_p3), %s1356_s27, 1024, %s1354_s17, %s1360_s15, %s1072_s14, %s1072_s14, %s1073_s20  }
 0x117 PF: > { %p902_p4 = scmp.ge.s32.totalorder %s1069_s30, 2  ;;  %s701_s19 = sand.u32 1, %s1041_s23  }
 0x118   : > { %s702_s22 = scalar_lea.sflag [#allocation4], %s701_s19 }
 0x119   : > { %p899_p5 = pnand %p902_p4, %p1172_p8 }
 0x11b   : > { %p900_p6 = pneg %p899_p5 }
 0x11d   : > { %1036 = dma.done.wait (%p900_p6), %s702_s22, 1024  }
 0x11e   : > { %1038 = vsyncadd (%p900_p6), %s702_s22, 4294966272  ;;  %s20_s30 = sadd.s32 1, %s1069_s30   ;;  %s1421_s23 = smov %s1045_s24 }
 0x11f   : > { %p17_p7 = scmp.ge.s32.totalorder %s20_s30, 10   ;;  %s1422_s24 = smov %s1049_s25 }
 0x120   : > { %s1423_s25 = smov %s1181_s16  ;;  %s1424_s26 = smov %s1061_s28 }
 0x121   : > { %s1425_s27 = smov %s1065_s29  ;;  %s1426_s28 = smov %s1429_s8 }
 0x122   : > { %s1427_s29 = smov %s1433_s9  ;;  %19 = sbr.rel (!%p17_p7) target bundleno = 7 (0x7), region = 88 }
 0x127   :  { %707 = vsyncpa [#allocation4], 1 }
 0x128   :  { %709 = vsyncpa [#allocation4 + $0x1], 1 }

</bundles_post_ra>
